<compile_context>
chip_gen: v7x
topology: tpu7x:2x2x1
jax: 0.10.0
libtpu: 0.0.40
codegen_flags: <defaults>
</compile_context>

<pallas_src>
import jax
import jax.numpy as jnp
from jax.experimental import pallas as pl
from jax.experimental.pallas import tpu as pltpu


def _round_up(x, m):
    return ((x + m - 1) // m) * m


def _make_kernel(A, TILE_A, M, C, alpha):
    def kernel(gt_ref, anch_ref, locp_ref, clsp_ref, out_ref):
        t = pl.program_id(1)

        gt = gt_ref[0].astype(jnp.float32)            # [M, 8]  cols: cx cy w h label valid 0 0
        anchors = anch_ref[...].astype(jnp.float32)   # [4, TILE_A] rows: cx cy w h
        loc_preds = locp_ref[0].astype(jnp.float32)   # [4, TILE_A]
        cls_preds = clsp_ref[0].astype(jnp.float32)   # [C, TILE_A]

        # ---- anchors (lane axis = anchors) ----
        ax = anchors[0:1, :]
        ay = anchors[1:2, :]
        aw = anchors[2:3, :]
        ah = anchors[3:4, :]                          # [1, TA]
        a1x = ax - 0.5 * aw
        a1y = ay - 0.5 * ah
        a2x = ax + 0.5 * aw
        a2y = ay + 0.5 * ah

        # ---- gt boxes (sublane axis = gt index) ----
        gx = gt[:, 0:1]
        gy = gt[:, 1:2]
        gw = gt[:, 2:3]
        gh = gt[:, 3:4]                               # [M, 1]
        glab = gt[:, 4:5]
        gval = gt[:, 5:6]
        g1x = gx - 0.5 * gw
        g1y = gy - 0.5 * gh
        g2x = gx + 0.5 * gw
        g2y = gy + 0.5 * gh

        # ---- IoU [M, TA] (with the +1 convention of the reference implementation) ----
        iw = jnp.maximum(jnp.minimum(a2x, g2x) - jnp.maximum(a1x, g1x) + 1.0, 0.0)
        ih = jnp.maximum(jnp.minimum(a2y, g2y) - jnp.maximum(a1y, g1y) + 1.0, 0.0)
        inter = iw * ih
        area_a = (a2x - a1x + 1.0) * (a2y - a1y + 1.0)     # [1, TA]
        area_g = (g2x - g1x + 1.0) * (g2y - g1y + 1.0)     # [M, 1]
        iou = inter / (area_a + area_g - inter)            # exact divide (IoU thresholds)
        iou = jnp.where(gval > 0.5, iou, -1.0)             # padded gt rows never win

        # ---- argmax over gt (first occurrence) as a one-hot along the 8-deep sublane axis ----
        max_iou = jnp.max(iou, axis=0, keepdims=True)                       # [1, TA]
        row = jax.lax.broadcasted_iota(jnp.int32, (M, TILE_A), 0).astype(jnp.float32)
        first = jnp.min(jnp.where(iou >= max_iou, row, jnp.float32(M)),
                        axis=0, keepdims=True)                              # [1, TA]
        onehot = (row == first).astype(jnp.float32)                         # [M, TA]

        # matched gt attributes (cheap 8-sublane reductions; MXU dot is not worth it at M<=8)
        mbx = jnp.sum(onehot * gx, axis=0, keepdims=True)
        mby = jnp.sum(onehot * gy, axis=0, keepdims=True)
        mbw = jnp.sum(onehot * gw, axis=0, keepdims=True)
        mbh = jnp.sum(onehot * gh, axis=0, keepdims=True)
        mlab = jnp.sum(onehot * glab, axis=0, keepdims=True)                # [1, TA]

        # ---- location targets ----
        tx = (mbx - ax) / aw
        ty = (mby - ay) / ah
        tw = jnp.log(mbw / aw)
        th = jnp.log(mbh / ah)

        # ---- class targets: 1 + label, 0 for iou < 0.5, -1 for 0.4 < iou < 0.5 ----
        cls_t = 1.0 + mlab
        cls_t = jnp.where(max_iou < 0.5, 0.0, cls_t)
        cls_t = jnp.where(jnp.logical_and(max_iou > 0.4, max_iou < 0.5), -1.0, cls_t)

        # anchors beyond the true anchor count (lane padding) contribute nothing
        lane = jax.lax.broadcasted_iota(jnp.int32, (1, TILE_A), 1)
        a_valid = (lane + t * TILE_A) < A                                    # [1, TA]

        pos = jnp.logical_and(cls_t > 0.0, a_valid)
        pos_neg = jnp.logical_and(cls_t > -1.0, a_valid)
        num_pos = jnp.sum(pos.astype(jnp.float32))

        # ---- SmoothL1 (sum) over positive anchors ----
        def sl1(d):
            ad = jnp.abs(d)
            return jnp.where(ad < 1.0, 0.5 * d * d, ad - 0.5)

        loc_l = (sl1(loc_preds[0:1, :] - tx) + sl1(loc_preds[1:2, :] - ty)
                 + sl1(loc_preds[2:3, :] - tw) + sl1(loc_preds[3:4, :] - th))   # [1, TA]
        loc_loss = jnp.sum(jnp.where(pos, loc_l, 0.0))

        # ---- Focal loss (alpha=0.25, gamma=2) over non-ignored anchors ----
        cls_idx = jax.lax.broadcasted_iota(jnp.int32, (C, TILE_A), 0).astype(jnp.float32) + 1.0
        tgt = (cls_t == cls_idx).astype(jnp.float32)                         # [C, TA]
        x = cls_preds
        # single exp, shared between sigmoid and the stable-BCE log term; approx recip -> EUP
        e = jnp.exp(-jnp.abs(x))
        r = pl.reciprocal(1.0 + e, approx=True)
        p = jnp.where(x >= 0.0, r, e * r)                                    # sigmoid(x)
        pt = p * tgt + (1.0 - p) * (1.0 - tgt)
        one_m_pt = 1.0 - pt
        wgt = (alpha * tgt + (1.0 - alpha) * (1.0 - tgt)) * one_m_pt * one_m_pt   # gamma = 2
        bce = jnp.maximum(x, 0.0) - x * tgt + jnp.log1p(e)
        cls_loss = jnp.sum(jnp.where(pos_neg, wgt * bce, 0.0))

        # ---- per-(batch, tile) partial sums into this step's own lane-dense output block ----
        sub = jax.lax.broadcasted_iota(jnp.int32, (8, 128), 0)
        lan = jax.lax.broadcasted_iota(jnp.int32, (8, 128), 1)
        on_row0 = sub == 0
        tile = jnp.where(jnp.logical_and(on_row0, lan == 0), loc_loss,
               jnp.where(jnp.logical_and(on_row0, lan == 1), cls_loss,
               jnp.where(jnp.logical_and(on_row0, lan == 2), num_pos, 0.0)))
        out_ref[0, 0, :, :] = tile

    return kernel


def retinanet_loss(anchors, gt_boxes, gt_labels, gt_valid, loc_preds, cls_preds,
                   num_classes=20, alpha=0.25, tile_a=512):
    """anchors [A,4] xywh(px); gt_boxes [B,M,4] xywh(px); gt_labels [B,M]; gt_valid [B,M];
       loc_preds [B,A,4]; cls_preds [B,A,num_classes] (any float dtype, e.g. bf16)."""
    B, A, _ = loc_preds.shape
    M = gt_boxes.shape[1]
    C = num_classes

    TILE_A = min(int(tile_a), _round_up(A, 128))
    A_pad = _round_up(A, TILE_A)
    n_tiles = A_pad // TILE_A
    pad = A_pad - A

    # anchors -> [4, A_pad]; pad with unit boxes (w = h = 1) so padded lanes stay finite.
    anch = anchors.astype(jnp.float32)
    if pad:
        pad_rows = jnp.concatenate(
            [jnp.zeros((pad, 2), jnp.float32), jnp.ones((pad, 2), jnp.float32)], axis=1)
        anch = jnp.concatenate([anch, pad_rows], axis=0)
    anch_t = jnp.transpose(anch, (1, 0))                                   # [4, A_pad]

    # predictions: keep native dtype over the DMA (no f32 up-cast in the wrapper).
    locp = jnp.transpose(loc_preds, (0, 2, 1))                             # [B, 4, A]
    clsp = jnp.transpose(cls_preds, (0, 2, 1))                             # [B, C, A]
    if pad:
        locp = jnp.pad(locp, ((0, 0), (0, 0), (0, pad)))
        clsp = jnp.pad(clsp, ((0, 0), (0, 0), (0, pad)))

    # gt packed as [B, M, 8]: cx cy w h label valid 0 0
    gt_cols = jnp.concatenate(
        [gt_boxes.astype(jnp.float32),
         gt_labels.astype(jnp.float32)[..., None],
         gt_valid.astype(jnp.float32)[..., None],
         jnp.zeros((B, M, 2), jnp.float32)], axis=-1)

    kernel = _make_kernel(A, TILE_A, M, C, float(alpha))

    partials = pl.pallas_call(
        kernel,
        out_shape=jax.ShapeDtypeStruct((B, n_tiles, 8, 128), jnp.float32),
        grid_spec=pltpu.PrefetchScalarGridSpec(
            num_scalar_prefetch=0,
            grid=(B, n_tiles),
            in_specs=[
                pl.BlockSpec((1, M, 8), lambda b, t: (b, 0, 0)),           # gt (per batch)
                pl.BlockSpec((4, TILE_A), lambda b, t: (0, t)),            # anchors (per tile)
                pl.BlockSpec((1, 4, TILE_A), lambda b, t: (b, 0, t)),      # loc preds
                pl.BlockSpec((1, C, TILE_A), lambda b, t: (b, 0, t)),      # cls preds
            ],
            out_specs=pl.BlockSpec((1, 1, 8, 128), lambda b, t: (b, t, 0, 0)),
        ),
        compiler_params=pltpu.CompilerParams(
            dimension_semantics=("parallel", "parallel"),   # megacore-safe: disjoint output blocks
            vmem_limit_bytes=16 * 1024 * 1024,              # well under v5e's scoped budget too
        ),
    )(gt_cols, anch_t, locp, clsp)

    loc_total = jnp.sum(partials[:, :, 0, 0])
    cls_total = jnp.sum(partials[:, :, 0, 1])
    num_pos = jnp.sum(partials[:, :, 0, 2])
    denom = jnp.maximum(num_pos, 1.0)
    return {"loss": (loc_total + cls_total) / denom,
            "Localization": loc_total / denom,
            "Classification": cls_total / denom}


def reference_loss(anchors, gt_boxes, gt_labels, gt_valid, loc_preds, cls_preds,
                   num_classes=20, alpha=0.25):
    """Pure-JAX mirror of the PyTorch forward (for correctness check)."""
    loc_preds = loc_preds.astype(jnp.float32)
    cls_preds = cls_preds.astype(jnp.float32)
    anchors = anchors.astype(jnp.float32)
    B = loc_preds.shape[0]
    a1 = anchors[:, :2] - anchors[:, 2:] / 2
    a2 = anchors[:, :2] + anchors[:, 2:] / 2
    total_loc = jnp.float32(0.0)
    total_cls = jnp.float32(0.0)
    total_pos = jnp.float32(0.0)
    for b in range(B):
        g = gt_boxes[b].astype(jnp.float32)
        lab = gt_labels[b].astype(jnp.float32)
        val = gt_valid[b].astype(jnp.float32)
        g1 = g[:, :2] - g[:, 2:] / 2
        g2 = g[:, :2] + g[:, 2:] / 2
        lt = jnp.maximum(a1[:, None, :], g1[None])
        rb = jnp.minimum(a2[:, None, :], g2[None])
        wh = jnp.maximum(rb - lt + 1.0, 0.0)
        inter = wh[..., 0] * wh[..., 1]
        area1 = (a2[:, 0] - a1[:, 0] + 1) * (a2[:, 1] - a1[:, 1] + 1)
        area2 = (g2[:, 0] - g1[:, 0] + 1) * (g2[:, 1] - g1[:, 1] + 1)
        iou = inter / (area1[:, None] + area2[None] - inter)
        iou = jnp.where(val[None] > 0.5, iou, -1.0)
        max_iou = iou.max(axis=1)
        ids = jnp.argmax(iou, axis=1)
        mb = g[ids]
        mlab = lab[ids]
        txy = (mb[:, :2] - anchors[:, :2]) / anchors[:, 2:]
        twh = jnp.log(mb[:, 2:] / anchors[:, 2:])
        loc_t = jnp.concatenate([txy, twh], axis=1)
        cls_t = 1.0 + mlab
        cls_t = jnp.where(max_iou < 0.5, 0.0, cls_t)
        cls_t = jnp.where((max_iou > 0.4) & (max_iou < 0.5), -1.0, cls_t)
        pos = cls_t > 0
        total_pos += jnp.sum(pos.astype(jnp.float32))
        d = loc_preds[b] - loc_t
        sl1 = jnp.where(jnp.abs(d) < 1.0, 0.5 * d * d, jnp.abs(d) - 0.5)
        total_loc += jnp.sum(jnp.where(pos[:, None], sl1, 0.0))
        cls_idx = jnp.arange(1, num_classes + 1, dtype=jnp.float32)[None, :]
        t = (cls_t[:, None] == cls_idx).astype(jnp.float32)
        x = cls_preds[b]
        p = jax.nn.sigmoid(x)
        pt = p * t + (1 - p) * (1 - t)
        w = (alpha * t + (1 - alpha) * (1 - t)) * (1 - pt) ** 2
        bce = jnp.maximum(x, 0.0) - x * t + jnp.log1p(jnp.exp(-jnp.abs(x)))
        pos_neg = cls_t > -1
        total_cls += jnp.sum(jnp.where(pos_neg[:, None], w * bce, 0.0))
    np_ = jnp.maximum(total_pos, 1.0)
    return {"loss": (total_loc + total_cls) / np_,
            "Localization": total_loc / np_,
            "Classification": total_cls / np_}


if __name__ == "__main__":
    key = jax.random.PRNGKey(0)
    B, A, M, C = 2, 128, 8, 20
    img_size = 600.0

    # Deterministic anchor set (the module's `iou_boxes`): 16x8 grid of centers, fixed w/h.
    ys, xs = jnp.meshgrid(jnp.arange(8, dtype=jnp.float32),
                          jnp.arange(16, dtype=jnp.float32), indexing="ij")
    cx = (xs.reshape(-1) + 0.5) * (img_size / 16.0)
    cy = (ys.reshape(-1) + 0.5) * (img_size / 8.0)
    w = jnp.full((A,), 120.0, jnp.float32)
    h = jnp.full((A,), 90.0, jnp.float32)
    anchors = jnp.stack([cx, cy, w, h], axis=1)

    k1, k2, k3, k4, k5 = jax.random.split(key, 5)
    gt_cxy = jax.random.uniform(k1, (B, M, 2), minval=0.2, maxval=0.8)
    gt_wh = jax.random.uniform(k2, (B, M, 2), minval=0.1, maxval=0.4)
    gt_boxes = jnp.concatenate([gt_cxy, gt_wh], axis=-1) * img_size     # xywh, pixels
    gt_labels = jax.random.randint(k3, (B, M), 0, C).astype(jnp.float32)
    valid_counts = jnp.array([5, 3])                                    # variable #gt per image
    gt_valid = (jnp.arange(M)[None, :] < valid_counts[:, None]).astype(jnp.float32)

    # Predictions in bf16: the kernel DMAs them in their native dtype and casts in VMEM.
    loc_preds = (0.1 * jax.random.normal(k4, (B, A, 4), jnp.float32)).astype(jnp.bfloat16)
    cls_preds = jax.random.normal(k5, (B, A, C), jnp.float32).astype(jnp.bfloat16)

    out = retinanet_loss(anchors, gt_boxes, gt_labels, gt_valid, loc_preds, cls_preds,
                         num_classes=C)
    jax.block_until_ready(out)

    ref = reference_loss(anchors, gt_boxes, gt_labels, gt_valid, loc_preds, cls_preds,
                         num_classes=C)
    for k_ in ("loss", "Localization", "Classification"):
        assert jnp.allclose(out[k_], ref[k_], rtol=2e-2, atol=1e-2), (k_, out[k_], ref[k_])

    print("KERNEL_OK")
</pallas_src>

<mosaic_0001>
module attributes {stable_mosaic.version = 11 : i64} {
  func.func @kernel(%arg0: i32, %arg1: i32, %arg2: memref<1x8x8xf32, #tpu.memory_space<vmem>>, %arg3: memref<4x128xf32, #tpu.memory_space<vmem>>, %arg4: memref<1x4x128xbf16, #tpu.memory_space<vmem>>, %arg5: memref<1x20x128xbf16, #tpu.memory_space<vmem>>, %arg6: memref<1x1x8x128xf32, #tpu.memory_space<vmem>>) attributes {dimension_semantics = [#tpu.dimension_semantics<parallel>, #tpu.dimension_semantics<parallel>], iteration_bounds = array<i64: 2, 1>, scalar_prefetch = 0 : i64, scratch_operands = 0 : i64, tpu.core_type = #tpu.core_type<tc>, window_params = [{transform_indices = @transform_0, window_bounds = array<i64: 1, 8, 8>}, {transform_indices = @transform_1, window_bounds = array<i64: 4, 128>}, {transform_indices = @transform_2, window_bounds = array<i64: 1, 4, 128>}, {transform_indices = @transform_3, window_bounds = array<i64: 1, 20, 128>}, {transform_indices = @transform_4, window_bounds = array<i64: 1, 1, 8, 128>}]} {
    %c0 = arith.constant 0 : index
    %c0_0 = arith.constant 0 : index
    %c0_1 = arith.constant 0 : index
    %0 = vector.load %arg2[%c0, %c0_0, %c0_1] : memref<1x8x8xf32, #tpu.memory_space<vmem>>, vector<1x8x8xf32>
    %1 = vector.shape_cast %0 : vector<1x8x8xf32> to vector<8x8xf32>
    %c0_2 = arith.constant 0 : index
    %c0_3 = arith.constant 0 : index
    %2 = vector.load %arg3[%c0_2, %c0_3] : memref<4x128xf32, #tpu.memory_space<vmem>>, vector<4x128xf32>
    %c0_4 = arith.constant 0 : index
    %c0_5 = arith.constant 0 : index
    %c0_6 = arith.constant 0 : index
    %3 = vector.load %arg4[%c0_4, %c0_5, %c0_6] : memref<1x4x128xbf16, #tpu.memory_space<vmem>>, vector<1x4x128xbf16>
    %4 = vector.shape_cast %3 : vector<1x4x128xbf16> to vector<4x128xbf16>
    %5 = arith.extf %4 : vector<4x128xbf16> to vector<4x128xf32>
    %c0_7 = arith.constant 0 : index
    %c0_8 = arith.constant 0 : index
    %c0_9 = arith.constant 0 : index
    %6 = vector.load %arg5[%c0_7, %c0_8, %c0_9] : memref<1x20x128xbf16, #tpu.memory_space<vmem>>, vector<1x20x128xbf16>
    %7 = vector.shape_cast %6 : vector<1x20x128xbf16> to vector<20x128xbf16>
    %8 = arith.extf %7 : vector<20x128xbf16> to vector<20x128xf32>
    %9 = vector.extract_strided_slice %2 {offsets = [0, 0], sizes = [1, 128], strides = [1, 1]} : vector<4x128xf32> to vector<1x128xf32>
    %10 = vector.extract_strided_slice %2 {offsets = [1, 0], sizes = [1, 128], strides = [1, 1]} : vector<4x128xf32> to vector<1x128xf32>
    %11 = vector.extract_strided_slice %2 {offsets = [2, 0], sizes = [1, 128], strides = [1, 1]} : vector<4x128xf32> to vector<1x128xf32>
    %12 = vector.extract_strided_slice %2 {offsets = [3, 0], sizes = [1, 128], strides = [1, 1]} : vector<4x128xf32> to vector<1x128xf32>
    %cst = arith.constant 5.000000e-01 : f32
    %13 = vector.broadcast %cst : f32 to vector<1x128xf32>
    %14 = arith.mulf %13, %11 : vector<1x128xf32>
    %15 = arith.subf %9, %14 : vector<1x128xf32>
    %cst_10 = arith.constant 5.000000e-01 : f32
    %16 = vector.broadcast %cst_10 : f32 to vector<1x128xf32>
    %17 = arith.mulf %16, %12 : vector<1x128xf32>
    %18 = arith.subf %10, %17 : vector<1x128xf32>
    %cst_11 = arith.constant 5.000000e-01 : f32
    %19 = vector.broadcast %cst_11 : f32 to vector<1x128xf32>
    %20 = arith.mulf %19, %11 : vector<1x128xf32>
    %21 = arith.addf %9, %20 : vector<1x128xf32>
    %cst_12 = arith.constant 5.000000e-01 : f32
    %22 = vector.broadcast %cst_12 : f32 to vector<1x128xf32>
    %23 = arith.mulf %22, %12 : vector<1x128xf32>
    %24 = arith.addf %10, %23 : vector<1x128xf32>
    %25 = vector.extract_strided_slice %1 {offsets = [0, 0], sizes = [8, 1], strides = [1, 1]} : vector<8x8xf32> to vector<8x1xf32>
    %26 = vector.extract_strided_slice %1 {offsets = [0, 1], sizes = [8, 1], strides = [1, 1]} : vector<8x8xf32> to vector<8x1xf32>
    %27 = vector.extract_strided_slice %1 {offsets = [0, 2], sizes = [8, 1], strides = [1, 1]} : vector<8x8xf32> to vector<8x1xf32>
    %28 = vector.extract_strided_slice %1 {offsets = [0, 3], sizes = [8, 1], strides = [1, 1]} : vector<8x8xf32> to vector<8x1xf32>
    %29 = vector.extract_strided_slice %1 {offsets = [0, 4], sizes = [8, 1], strides = [1, 1]} : vector<8x8xf32> to vector<8x1xf32>
    %30 = vector.extract_strided_slice %1 {offsets = [0, 5], sizes = [8, 1], strides = [1, 1]} : vector<8x8xf32> to vector<8x1xf32>
    %cst_13 = arith.constant 5.000000e-01 : f32
    %31 = vector.broadcast %cst_13 : f32 to vector<8x1xf32>
    %32 = arith.mulf %31, %27 : vector<8x1xf32>
    %33 = arith.subf %25, %32 : vector<8x1xf32>
    %cst_14 = arith.constant 5.000000e-01 : f32
    %34 = vector.broadcast %cst_14 : f32 to vector<8x1xf32>
    %35 = arith.mulf %34, %28 : vector<8x1xf32>
    %36 = arith.subf %26, %35 : vector<8x1xf32>
    %cst_15 = arith.constant 5.000000e-01 : f32
    %37 = vector.broadcast %cst_15 : f32 to vector<8x1xf32>
    %38 = arith.mulf %37, %27 : vector<8x1xf32>
    %39 = arith.addf %25, %38 : vector<8x1xf32>
    %cst_16 = arith.constant 5.000000e-01 : f32
    %40 = vector.broadcast %cst_16 : f32 to vector<8x1xf32>
    %41 = arith.mulf %40, %28 : vector<8x1xf32>
    %42 = arith.addf %26, %41 : vector<8x1xf32>
    %43 = vector.broadcast %21 : vector<1x128xf32> to vector<8x128xf32>
    %44 = vector.broadcast %39 : vector<8x1xf32> to vector<8x128xf32>
    %45 = arith.minimumf %43, %44 : vector<8x128xf32>
    %46 = vector.broadcast %15 : vector<1x128xf32> to vector<8x128xf32>
    %47 = vector.broadcast %33 : vector<8x1xf32> to vector<8x128xf32>
    %48 = arith.maximumf %46, %47 : vector<8x128xf32>
    %49 = arith.subf %45, %48 : vector<8x128xf32>
    %cst_17 = arith.constant 1.000000e+00 : f32
    %50 = vector.broadcast %cst_17 : f32 to vector<8x128xf32>
    %51 = arith.addf %49, %50 : vector<8x128xf32>
    %cst_18 = arith.constant 0.000000e+00 : f32
    %52 = vector.broadcast %cst_18 : f32 to vector<8x128xf32>
    %53 = arith.maximumf %51, %52 : vector<8x128xf32>
    %54 = vector.broadcast %24 : vector<1x128xf32> to vector<8x128xf32>
    %55 = vector.broadcast %42 : vector<8x1xf32> to vector<8x128xf32>
    %56 = arith.minimumf %54, %55 : vector<8x128xf32>
    %57 = vector.broadcast %18 : vector<1x128xf32> to vector<8x128xf32>
    %58 = vector.broadcast %36 : vector<8x1xf32> to vector<8x128xf32>
    %59 = arith.maximumf %57, %58 : vector<8x128xf32>
    %60 = arith.subf %56, %59 : vector<8x128xf32>
    %cst_19 = arith.constant 1.000000e+00 : f32
    %61 = vector.broadcast %cst_19 : f32 to vector<8x128xf32>
    %62 = arith.addf %60, %61 : vector<8x128xf32>
    %cst_20 = arith.constant 0.000000e+00 : f32
    %63 = vector.broadcast %cst_20 : f32 to vector<8x128xf32>
    %64 = arith.maximumf %62, %63 : vector<8x128xf32>
    %65 = arith.mulf %53, %64 : vector<8x128xf32>
    %66 = arith.subf %21, %15 : vector<1x128xf32>
    %cst_21 = arith.constant 1.000000e+00 : f32
    %67 = vector.broadcast %cst_21 : f32 to vector<1x128xf32>
    %68 = arith.addf %66, %67 : vector<1x128xf32>
    %69 = arith.subf %24, %18 : vector<1x128xf32>
    %cst_22 = arith.constant 1.000000e+00 : f32
    %70 = vector.broadcast %cst_22 : f32 to vector<1x128xf32>
    %71 = arith.addf %69, %70 : vector<1x128xf32>
    %72 = arith.mulf %68, %71 : vector<1x128xf32>
    %73 = arith.subf %39, %33 : vector<8x1xf32>
    %cst_23 = arith.constant 1.000000e+00 : f32
    %74 = vector.broadcast %cst_23 : f32 to vector<8x1xf32>
    %75 = arith.addf %73, %74 : vector<8x1xf32>
    %76 = arith.subf %42, %36 : vector<8x1xf32>
    %cst_24 = arith.constant 1.000000e+00 : f32
    %77 = vector.broadcast %cst_24 : f32 to vector<8x1xf32>
    %78 = arith.addf %76, %77 : vector<8x1xf32>
    %79 = arith.mulf %75, %78 : vector<8x1xf32>
    %80 = vector.broadcast %72 : vector<1x128xf32> to vector<8x128xf32>
    %81 = vector.broadcast %79 : vector<8x1xf32> to vector<8x128xf32>
    %82 = arith.addf %80, %81 : vector<8x128xf32>
    %83 = arith.subf %82, %65 : vector<8x128xf32>
    %84 = arith.divf %65, %83 : vector<8x128xf32>
    %cst_25 = arith.constant 5.000000e-01 : f32
    %85 = vector.broadcast %cst_25 : f32 to vector<8x1xf32>
    %86 = arith.cmpf ogt, %30, %85 : vector<8x1xf32>
    %cst_26 = arith.constant -1.000000e+00 : f32
    %87 = vector.shape_cast %86 : vector<8x1xi1> to vector<8x1xi1>
    %88 = vector.broadcast %87 : vector<8x1xi1> to vector<8x128xi1>
    %89 = vector.broadcast %cst_26 : f32 to vector<8x128xf32>
    %90 = arith.select %88, %84, %89 : vector<8x128xi1>, vector<8x128xf32>
    %cst_27 = arith.constant dense<0xFF800000> : vector<128xf32>
    %91 = vector.multi_reduction <maximumf>, %90, %cst_27 [0] : vector<8x128xf32> to vector<128xf32>
    %92 = vector.shape_cast %91 : vector<128xf32> to vector<1x128xf32>
    %93 = tpu.iota {dimensions = array<i32: 0>} : vector<8x128xi32>
    %94 = arith.sitofp %93 : vector<8x128xi32> to vector<8x128xf32>
    %95 = vector.broadcast %92 : vector<1x128xf32> to vector<8x128xf32>
    %96 = arith.cmpf oge, %90, %95 : vector<8x128xf32>
    %cst_28 = arith.constant 8.000000e+00 : f32
    %97 = vector.broadcast %cst_28 : f32 to vector<8x128xf32>
    %98 = arith.select %96, %94, %97 : vector<8x128xi1>, vector<8x128xf32>
    %cst_29 = arith.constant dense<0x7F800000> : vector<128xf32>
    %99 = vector.multi_reduction <minimumf>, %98, %cst_29 [0] : vector<8x128xf32> to vector<128xf32>
    %100 = vector.shape_cast %99 : vector<128xf32> to vector<1x128xf32>
    %101 = vector.broadcast %100 : vector<1x128xf32> to vector<8x128xf32>
    %102 = arith.cmpf oeq, %94, %101 : vector<8x128xf32>
    %103 = arith.extui %102 : vector<8x128xi1> to vector<8x128xi32>
    %104 = arith.sitofp %103 : vector<8x128xi32> to vector<8x128xf32>
    %105 = vector.broadcast %25 : vector<8x1xf32> to vector<8x128xf32>
    %106 = arith.mulf %104, %105 : vector<8x128xf32>
    %cst_30 = arith.constant dense<0.000000e+00> : vector<128xf32>
    %107 = vector.multi_reduction <add>, %106, %cst_30 [0] : vector<8x128xf32> to vector<128xf32>
    %108 = vector.shape_cast %107 : vector<128xf32> to vector<1x128xf32>
    %109 = vector.broadcast %26 : vector<8x1xf32> to vector<8x128xf32>
    %110 = arith.mulf %104, %109 : vector<8x128xf32>
    %cst_31 = arith.constant dense<0.000000e+00> : vector<128xf32>
    %111 = vector.multi_reduction <add>, %110, %cst_31 [0] : vector<8x128xf32> to vector<128xf32>
    %112 = vector.shape_cast %111 : vector<128xf32> to vector<1x128xf32>
    %113 = vector.broadcast %27 : vector<8x1xf32> to vector<8x128xf32>
    %114 = arith.mulf %104, %113 : vector<8x128xf32>
    %cst_32 = arith.constant dense<0.000000e+00> : vector<128xf32>
    %115 = vector.multi_reduction <add>, %114, %cst_32 [0] : vector<8x128xf32> to vector<128xf32>
    %116 = vector.shape_cast %115 : vector<128xf32> to vector<1x128xf32>
    %117 = vector.broadcast %28 : vector<8x1xf32> to vector<8x128xf32>
    %118 = arith.mulf %104, %117 : vector<8x128xf32>
    %cst_33 = arith.constant dense<0.000000e+00> : vector<128xf32>
    %119 = vector.multi_reduction <add>, %118, %cst_33 [0] : vector<8x128xf32> to vector<128xf32>
    %120 = vector.shape_cast %119 : vector<128xf32> to vector<1x128xf32>
    %121 = vector.broadcast %29 : vector<8x1xf32> to vector<8x128xf32>
    %122 = arith.mulf %104, %121 : vector<8x128xf32>
    %cst_34 = arith.constant dense<0.000000e+00> : vector<128xf32>
    %123 = vector.multi_reduction <add>, %122, %cst_34 [0] : vector<8x128xf32> to vector<128xf32>
    %124 = vector.shape_cast %123 : vector<128xf32> to vector<1x128xf32>
    %125 = arith.subf %108, %9 : vector<1x128xf32>
    %126 = arith.divf %125, %11 : vector<1x128xf32>
    %127 = arith.subf %112, %10 : vector<1x128xf32>
    %128 = arith.divf %127, %12 : vector<1x128xf32>
    %129 = arith.divf %116, %11 : vector<1x128xf32>
    %130 = math.log %129 : vector<1x128xf32>
    %131 = arith.divf %120, %12 : vector<1x128xf32>
    %132 = math.log %131 : vector<1x128xf32>
    %cst_35 = arith.constant 1.000000e+00 : f32
    %133 = vector.broadcast %cst_35 : f32 to vector<1x128xf32>
    %134 = arith.addf %133, %124 : vector<1x128xf32>
    %cst_36 = arith.constant 5.000000e-01 : f32
    %135 = vector.broadcast %cst_36 : f32 to vector<1x128xf32>
    %136 = arith.cmpf olt, %92, %135 : vector<1x128xf32>
    %cst_37 = arith.constant 0.000000e+00 : f32
    %137 = vector.broadcast %cst_37 : f32 to vector<1x128xf32>
    %138 = arith.select %136, %137, %134 : vector<1x128xi1>, vector<1x128xf32>
    %cst_38 = arith.constant 4.000000e-01 : f32
    %139 = vector.broadcast %cst_38 : f32 to vector<1x128xf32>
    %140 = arith.cmpf ogt, %92, %139 : vector<1x128xf32>
    %cst_39 = arith.constant 5.000000e-01 : f32
    %141 = vector.broadcast %cst_39 : f32 to vector<1x128xf32>
    %142 = arith.cmpf olt, %92, %141 : vector<1x128xf32>
    %143 = arith.andi %140, %142 : vector<1x128xi1>
    %cst_40 = arith.constant -1.000000e+00 : f32
    %144 = vector.broadcast %cst_40 : f32 to vector<1x128xf32>
    %145 = arith.select %143, %144, %138 : vector<1x128xi1>, vector<1x128xf32>
    %146 = tpu.iota {dimensions = array<i32: 1>} : vector<1x128xi32>
    %c128_i32 = arith.constant 128 : i32
    %147 = arith.muli %arg1, %c128_i32 : i32
    %148 = vector.broadcast %147 : i32 to vector<1x128xi32>
    %149 = arith.addi %146, %148 : vector<1x128xi32>
    %c128_i32_41 = arith.constant 128 : i32
    %150 = vector.broadcast %c128_i32_41 : i32 to vector<1x128xi32>
    %151 = arith.cmpi slt, %149, %150 : vector<1x128xi32>
    %cst_42 = arith.constant 0.000000e+00 : f32
    %152 = vector.broadcast %cst_42 : f32 to vector<1x128xf32>
    %153 = arith.cmpf ogt, %145, %152 : vector<1x128xf32>
    %154 = arith.andi %153, %151 : vector<1x128xi1>
    %cst_43 = arith.constant -1.000000e+00 : f32
    %155 = vector.broadcast %cst_43 : f32 to vector<1x128xf32>
    %156 = arith.cmpf ogt, %145, %155 : vector<1x128xf32>
    %157 = arith.andi %156, %151 : vector<1x128xi1>
    %158 = arith.extui %154 : vector<1x128xi1> to vector<1x128xi32>
    %159 = arith.sitofp %158 : vector<1x128xi32> to vector<1x128xf32>
    %160 = vector.shape_cast %159 : vector<1x128xf32> to vector<1x1x128xf32>
    %cst_44 = arith.constant dense<0.000000e+00> : vector<1xf32>
    %161 = vector.multi_reduction <add>, %160, %cst_44 [1, 2] : vector<1x1x128xf32> to vector<1xf32>
    %162 = vector.shape_cast %161 : vector<1xf32> to vector<1x1x1xf32>
    %163 = vector.extract %162[0, 0, 0] : f32 from vector<1x1x1xf32>
    %164 = vector.extract_strided_slice %5 {offsets = [0, 0], sizes = [1, 128], strides = [1, 1]} : vector<4x128xf32> to vector<1x128xf32>
    %165 = arith.subf %164, %126 : vector<1x128xf32>
    %166 = math.absf %165 : vector<1x128xf32>
    %cst_45 = arith.constant 1.000000e+00 : f32
    %167 = vector.broadcast %cst_45 : f32 to vector<1x128xf32>
    %168 = arith.cmpf olt, %166, %167 : vector<1x128xf32>
    %cst_46 = arith.constant 5.000000e-01 : f32
    %169 = vector.broadcast %cst_46 : f32 to vector<1x128xf32>
    %170 = arith.mulf %169, %165 : vector<1x128xf32>
    %171 = arith.mulf %170, %165 : vector<1x128xf32>
    %cst_47 = arith.constant 5.000000e-01 : f32
    %172 = vector.broadcast %cst_47 : f32 to vector<1x128xf32>
    %173 = arith.subf %166, %172 : vector<1x128xf32>
    %174 = arith.select %168, %171, %173 : vector<1x128xi1>, vector<1x128xf32>
    %175 = vector.extract_strided_slice %5 {offsets = [1, 0], sizes = [1, 128], strides = [1, 1]} : vector<4x128xf32> to vector<1x128xf32>
    %176 = arith.subf %175, %128 : vector<1x128xf32>
    %177 = math.absf %176 : vector<1x128xf32>
    %cst_48 = arith.constant 1.000000e+00 : f32
    %178 = vector.broadcast %cst_48 : f32 to vector<1x128xf32>
    %179 = arith.cmpf olt, %177, %178 : vector<1x128xf32>
    %cst_49 = arith.constant 5.000000e-01 : f32
    %180 = vector.broadcast %cst_49 : f32 to vector<1x128xf32>
    %181 = arith.mulf %180, %176 : vector<1x128xf32>
    %182 = arith.mulf %181, %176 : vector<1x128xf32>
    %cst_50 = arith.constant 5.000000e-01 : f32
    %183 = vector.broadcast %cst_50 : f32 to vector<1x128xf32>
    %184 = arith.subf %177, %183 : vector<1x128xf32>
    %185 = arith.select %179, %182, %184 : vector<1x128xi1>, vector<1x128xf32>
    %186 = arith.addf %174, %185 : vector<1x128xf32>
    %187 = vector.extract_strided_slice %5 {offsets = [2, 0], sizes = [1, 128], strides = [1, 1]} : vector<4x128xf32> to vector<1x128xf32>
    %188 = arith.subf %187, %130 : vector<1x128xf32>
    %189 = math.absf %188 : vector<1x128xf32>
    %cst_51 = arith.constant 1.000000e+00 : f32
    %190 = vector.broadcast %cst_51 : f32 to vector<1x128xf32>
    %191 = arith.cmpf olt, %189, %190 : vector<1x128xf32>
    %cst_52 = arith.constant 5.000000e-01 : f32
    %192 = vector.broadcast %cst_52 : f32 to vector<1x128xf32>
    %193 = arith.mulf %192, %188 : vector<1x128xf32>
    %194 = arith.mulf %193, %188 : vector<1x128xf32>
    %cst_53 = arith.constant 5.000000e-01 : f32
    %195 = vector.broadcast %cst_53 : f32 to vector<1x128xf32>
    %196 = arith.subf %189, %195 : vector<1x128xf32>
    %197 = arith.select %191, %194, %196 : vector<1x128xi1>, vector<1x128xf32>
    %198 = arith.addf %186, %197 : vector<1x128xf32>
    %199 = vector.extract_strided_slice %5 {offsets = [3, 0], sizes = [1, 128], strides = [1, 1]} : vector<4x128xf32> to vector<1x128xf32>
    %200 = arith.subf %199, %132 : vector<1x128xf32>
    %201 = math.absf %200 : vector<1x128xf32>
    %cst_54 = arith.constant 1.000000e+00 : f32
    %202 = vector.broadcast %cst_54 : f32 to vector<1x128xf32>
    %203 = arith.cmpf olt, %201, %202 : vector<1x128xf32>
    %cst_55 = arith.constant 5.000000e-01 : f32
    %204 = vector.broadcast %cst_55 : f32 to vector<1x128xf32>
    %205 = arith.mulf %204, %200 : vector<1x128xf32>
    %206 = arith.mulf %205, %200 : vector<1x128xf32>
    %cst_56 = arith.constant 5.000000e-01 : f32
    %207 = vector.broadcast %cst_56 : f32 to vector<1x128xf32>
    %208 = arith.subf %201, %207 : vector<1x128xf32>
    %209 = arith.select %203, %206, %208 : vector<1x128xi1>, vector<1x128xf32>
    %210 = arith.addf %198, %209 : vector<1x128xf32>
    %cst_57 = arith.constant 0.000000e+00 : f32
    %211 = vector.broadcast %cst_57 : f32 to vector<1x128xf32>
    %212 = arith.select %154, %210, %211 : vector<1x128xi1>, vector<1x128xf32>
    %213 = vector.shape_cast %212 : vector<1x128xf32> to vector<1x1x128xf32>
    %cst_58 = arith.constant dense<0.000000e+00> : vector<1xf32>
    %214 = vector.multi_reduction <add>, %213, %cst_58 [1, 2] : vector<1x1x128xf32> to vector<1xf32>
    %215 = vector.shape_cast %214 : vector<1xf32> to vector<1x1x1xf32>
    %216 = vector.extract %215[0, 0, 0] : f32 from vector<1x1x1xf32>
    %217 = tpu.iota {dimensions = array<i32: 0>} : vector<20x128xi32>
    %218 = arith.sitofp %217 : vector<20x128xi32> to vector<20x128xf32>
    %cst_59 = arith.constant 1.000000e+00 : f32
    %219 = vector.broadcast %cst_59 : f32 to vector<20x128xf32>
    %220 = arith.addf %218, %219 : vector<20x128xf32>
    %221 = vector.broadcast %145 : vector<1x128xf32> to vector<20x128xf32>
    %222 = arith.cmpf oeq, %221, %220 : vector<20x128xf32>
    %223 = arith.extui %222 : vector<20x128xi1> to vector<20x128xi32>
    %224 = arith.sitofp %223 : vector<20x128xi32> to vector<20x128xf32>
    %225 = math.absf %8 : vector<20x128xf32>
    %cst_60 = arith.constant 0.000000e+00 : f32
    %226 = vector.broadcast %cst_60 : f32 to vector<20x128xf32>
    %227 = arith.subf %226, %225 : vector<20x128xf32>
    %228 = math.exp %227 : vector<20x128xf32>
    %cst_61 = arith.constant 1.000000e+00 : f32
    %229 = vector.broadcast %cst_61 : f32 to vector<20x128xf32>
    %230 = arith.addf %229, %228 : vector<20x128xf32>
    %231 = tpu.reciprocal %230 {approx = true} : vector<20x128xf32> -> vector<20x128xf32>
    %cst_62 = arith.constant 0.000000e+00 : f32
    %232 = vector.broadcast %cst_62 : f32 to vector<20x128xf32>
    %233 = arith.cmpf oge, %8, %232 : vector<20x128xf32>
    %234 = arith.mulf %228, %231 : vector<20x128xf32>
    %235 = arith.select %233, %231, %234 : vector<20x128xi1>, vector<20x128xf32>
    %236 = arith.mulf %235, %224 : vector<20x128xf32>
    %cst_63 = arith.constant 1.000000e+00 : f32
    %237 = vector.broadcast %cst_63 : f32 to vector<20x128xf32>
    %238 = arith.subf %237, %235 : vector<20x128xf32>
    %cst_64 = arith.constant 1.000000e+00 : f32
    %239 = vector.broadcast %cst_64 : f32 to vector<20x128xf32>
    %240 = arith.subf %239, %224 : vector<20x128xf32>
    %241 = arith.mulf %238, %240 : vector<20x128xf32>
    %242 = arith.addf %236, %241 : vector<20x128xf32>
    %cst_65 = arith.constant 1.000000e+00 : f32
    %243 = vector.broadcast %cst_65 : f32 to vector<20x128xf32>
    %244 = arith.subf %243, %242 : vector<20x128xf32>
    %cst_66 = arith.constant 2.500000e-01 : f32
    %245 = vector.broadcast %cst_66 : f32 to vector<20x128xf32>
    %246 = arith.mulf %245, %224 : vector<20x128xf32>
    %cst_67 = arith.constant 1.000000e+00 : f32
    %247 = vector.broadcast %cst_67 : f32 to vector<20x128xf32>
    %248 = arith.subf %247, %224 : vector<20x128xf32>
    %cst_68 = arith.constant 7.500000e-01 : f32
    %249 = vector.broadcast %cst_68 : f32 to vector<20x128xf32>
    %250 = arith.mulf %249, %248 : vector<20x128xf32>
    %251 = arith.addf %246, %250 : vector<20x128xf32>
    %252 = arith.mulf %251, %244 : vector<20x128xf32>
    %253 = arith.mulf %252, %244 : vector<20x128xf32>
    %cst_69 = arith.constant 0.000000e+00 : f32
    %254 = vector.broadcast %cst_69 : f32 to vector<20x128xf32>
    %255 = arith.maximumf %8, %254 : vector<20x128xf32>
    %256 = arith.mulf %8, %224 : vector<20x128xf32>
    %257 = arith.subf %255, %256 : vector<20x128xf32>
    %258 = math.log1p %228 : vector<20x128xf32>
    %259 = arith.addf %257, %258 : vector<20x128xf32>
    %260 = arith.mulf %253, %259 : vector<20x128xf32>
    %cst_70 = arith.constant 0.000000e+00 : f32
    %261 = vector.shape_cast %157 : vector<1x128xi1> to vector<1x128xi1>
    %262 = vector.broadcast %261 : vector<1x128xi1> to vector<20x128xi1>
    %263 = vector.broadcast %cst_70 : f32 to vector<20x128xf32>
    %264 = arith.select %262, %260, %263 : vector<20x128xi1>, vector<20x128xf32>
    %265 = vector.shape_cast %264 : vector<20x128xf32> to vector<1x20x128xf32>
    %cst_71 = arith.constant dense<0.000000e+00> : vector<1xf32>
    %266 = vector.multi_reduction <add>, %265, %cst_71 [1, 2] : vector<1x20x128xf32> to vector<1xf32>
    %267 = vector.shape_cast %266 : vector<1xf32> to vector<1x1x1xf32>
    %268 = vector.extract %267[0, 0, 0] : f32 from vector<1x1x1xf32>
    %269 = tpu.iota {dimensions = array<i32: 0>} : vector<8x128xi32>
    %270 = tpu.iota {dimensions = array<i32: 1>} : vector<8x128xi32>
    %c0_i32 = arith.constant 0 : i32
    %271 = vector.broadcast %c0_i32 : i32 to vector<8x128xi32>
    %272 = arith.cmpi eq, %269, %271 : vector<8x128xi32>
    %c0_i32_72 = arith.constant 0 : i32
    %273 = vector.broadcast %c0_i32_72 : i32 to vector<8x128xi32>
    %274 = arith.cmpi eq, %270, %273 : vector<8x128xi32>
    %275 = arith.andi %272, %274 : vector<8x128xi1>
    %c1_i32 = arith.constant 1 : i32
    %276 = vector.broadcast %c1_i32 : i32 to vector<8x128xi32>
    %277 = arith.cmpi eq, %270, %276 : vector<8x128xi32>
    %278 = arith.andi %272, %277 : vector<8x128xi1>
    %c2_i32 = arith.constant 2 : i32
    %279 = vector.broadcast %c2_i32 : i32 to vector<8x128xi32>
    %280 = arith.cmpi eq, %270, %279 : vector<8x128xi32>
    %281 = arith.andi %272, %280 : vector<8x128xi1>
    %cst_73 = arith.constant 0.000000e+00 : f32
    %282 = vector.broadcast %163 : f32 to vector<8x128xf32>
    %283 = vector.broadcast %cst_73 : f32 to vector<8x128xf32>
    %284 = arith.select %281, %282, %283 : vector<8x128xi1>, vector<8x128xf32>
    %285 = vector.broadcast %268 : f32 to vector<8x128xf32>
    %286 = arith.select %278, %285, %284 : vector<8x128xi1>, vector<8x128xf32>
    %287 = vector.broadcast %216 : f32 to vector<8x128xf32>
    %288 = arith.select %275, %287, %286 : vector<8x128xi1>, vector<8x128xf32>
    %c0_74 = arith.constant 0 : index
    %c0_75 = arith.constant 0 : index
    %c0_76 = arith.constant 0 : index
    %c0_77 = arith.constant 0 : index
    %289 = vector.load %arg6[%c0_74, %c0_75, %c0_76, %c0_77] : memref<1x1x8x128xf32, #tpu.memory_space<vmem>>, vector<1x1x8x128xf32>
    %290 = vector.shape_cast %289 : vector<1x1x8x128xf32> to vector<8x128xf32>
    %291 = vector.shape_cast %288 : vector<8x128xf32> to vector<1x1x8x128xf32>
    tpu.vector_store %arg6[%c0_74, %c0_75, %c0_76, %c0_77], %291 {strides = array<i32>} : memref<1x1x8x128xf32, #tpu.memory_space<vmem>>, vector<1x1x8x128xf32>,
    return
  }
  func.func @transform_0(%arg0: i32, %arg1: i32) -> (i32, i32, i32) {
    %c0_i32 = arith.constant 0 : i32
    %c0_i32_0 = arith.constant 0 : i32
    %c0_i32_1 = arith.constant 0 : i32
    return %arg0, %c0_i32, %c0_i32_0 : i32, i32, i32
  }
  func.func @transform_1(%arg0: i32, %arg1: i32) -> (i32, i32) {
    %c0_i32 = arith.constant 0 : i32
    %c0_i32_0 = arith.constant 0 : i32
    return %c0_i32, %arg1 : i32, i32
  }
  func.func @transform_2(%arg0: i32, %arg1: i32) -> (i32, i32, i32) {
    %c0_i32 = arith.constant 0 : i32
    %c0_i32_0 = arith.constant 0 : i32
    return %arg0, %c0_i32, %arg1 : i32, i32, i32
  }
  func.func @transform_3(%arg0: i32, %arg1: i32) -> (i32, i32, i32) {
    %c0_i32 = arith.constant 0 : i32
    %c0_i32_0 = arith.constant 0 : i32
    return %arg0, %c0_i32, %arg1 : i32, i32, i32
  }
  func.func @transform_4(%arg0: i32, %arg1: i32) -> (i32, i32, i32, i32) {
    %c0_i32 = arith.constant 0 : i32
    %c0_i32_0 = arith.constant 0 : i32
    %c0_i32_1 = arith.constant 0 : i32
    return %arg0, %arg1, %c0_i32, %c0_i32_0 : i32, i32, i32, i32
  }
}

</mosaic_0001>

<bundles_post_ra>
// kernel: tpu_custom_call.1
= control target key start
LH: loop header
LB: loop body
LE: loop exit
PB: predicated region body
PF: predicated region fallthrough
CT: control target
= control target key end

     0   :  { %9 = vsyncpa [#allocation3], 0  ;;  %s1395_s0 = inlined_call_operand.vmem [shape: f32[2,8,8], index: 0, kind: input, shape index: {}]   ;;  %s1396_s1 = inlined_call_operand.vmem [shape: f32[4,128], index: 1, kind: input, shape index: {}]   ;;  %s1397_s2 = inlined_call_operand.vmem [shape: bf16[2,4,128], index: 2, kind: input, shape index: {}]   ;;  %s1398_s3 = inlined_call_operand.vmem [shape: bf16[2,20,128], index: 3, kind: input, shape index: {}]   ;;  %s1399_s4 = inlined_call_operand.hbm [shape: f32[2,1,8,128], index: 4, kind: output, shape index: {}]  }
   0x1   :  { %11 = vsyncpa [#allocation3 + $0x1], 0  ;;  %s1093_s15 = smov 0   ;;  %s1095_s16 = smov 0  }
   0x2   :  { %s1097_s17 = smov 0   ;;  %s1099_s18 = smov 0  }
   0x3   :  { %s1101_s19 = smov 0   ;;  %s1103_s20 = smov 0  }
   0x4 LB: > { %s839_s21 = sadd.s32 4294967295, %s1056_s20   ;;  %s840_s22 = sadd.s32 4294967294, %s1056_s20   ;;  %s1056_s20 = sphi %s1103_s20, %s17_s20   ;;  %s1052_s19 = sphi %s1101_s19, %s1414_s19   ;;  %s1048_s18 = sphi %s1099_s18, %s1413_s18   ;;  %s1044_s17 = sphi %s1097_s17, %s1412_s17   ;;  %s1040_s16 = sphi %s1095_s16, %s1411_s16   ;;  %s1036_s15 = sphi %s1093_s15, %s1410_s15  }
   0x5   : > { %s29_s23 = sadd.s32 1, %s1052_s19  ;;  %s146_s24 = sadd.s32 1, %s1044_s17 }
   0x6   : > { %p31_p0 = scmp.ge.s32.totalorder %s29_s23, 2  ;;  %p156_p1 = scmp.ne.s32.totalorder %s1044_s17, %s1040_s16 }
   0x7   : > { %p157_p2 = scmp.eq.s32.totalorder %s839_s21, 1  ;;  %p162_p3 = scmp.ne.s32.totalorder %s1040_s16, %s1036_s15 }
   0x8   : > { %s1416_s23 = smov (%p31_p0, %s29_s23), 0  ;;  %p163_p5 = scmp.eq.s32.totalorder %s840_s22, 1 }
   0x9   : > { %p1133_p4 = por %p157_p2, %p156_p1  ;;  %s141_s26 = ssub.s32 %s1052_s19, %s1416_s23 }
   0xa   : > { %p844_p6 = scmp.ge.s32.totalorder %s1056_s20, 1  ;;  %p144_p7 = scmp.eq.s32.totalorder %s141_s26, 0 }
   0xb   : > { %p1140_p8 = por %p163_p5, %p162_p3  ;;  %p216_p9 = scmp.lt.s32.totalorder %s1056_s20, 3 }
   0xc   : > { %s1146_s28 = scalar_select %p144_p7, %s1044_s17, %s146_s24  }
   0xd   : > { %p217_p10 = pnand %p844_p6, %p216_p9 }
   0xe   : > { %p260_p11 = scmp.lt.s32.totalorder (!%p217_p10), %s1048_s18, 1  ;;  %v1058_v0 = vmov (!%p217_p10), 0   ;;  %v1059_v1 = vmov (!%p217_p10), 1   ;;  %s1060_s8 = smov (!%p217_p10), 126   ;;  %v1062_v10 = vmov (!%p217_p10), 5   ;;  %v1063_v11 = vmov (!%p217_p10), 4  }
   0xf   : > { %220 = sbr.rel (%p217_p10) target bundleno = 712 (0x2c8), region = 36  ;;  %940 = vset.pattern.permute.xlu1 (!%p217_p10), %v1058_v0  ;;  %941 = vset.pattern.permute.xlu0 (!%p217_p10), %v1059_v1  ;;  %s1061_s9 = smov (!%p217_p10), 127   ;;  %v1064_v14 = vmov (!%p217_p10), 2   ;;  %v1065_v15 = vmov (!%p217_p10), 3   ;;  %v1159_v16 = vld [vmem:[%s1396_s1] sm:$0xf] (!%p217_p10)  ;;  %v306_v19 = vlaneseq (!%p217_p10) }
  0x10   : > { %v293_v18 = vmul.f32 (!%p217_p10), 0.5, %v1159_v16  ;;  %vm493_vm8 = vcmask (!%p217_p10), 1040384  }
  0x11   : > { %v1163_v21 = vshrl.u32 (!%p217_p10), %v306_v19, 7 }
  0x12   : > { %v295_v20 = vrot.slane (!%p217_p10), %v293_v18, 2 }
  0x13   : > { %v331_v23 = vsub.s32 (!%p217_p10), 1, %v1163_v21  ;;  %v308_v26 = vsub.s32 (!%p217_p10), 0, %v1163_v21  ;;  %v392_v18 = vcvt.s32.f32 (!%p217_p10), %v1163_v21 }
  0x14   : > { %v298_v24 = vadd.f32 (!%p217_p10), %v295_v20, %v1159_v16  ;;  %v297_v25 = vsub.f32 (!%p217_p10), %v1159_v16, %v295_v20 }
  0x16   : > { %s1150_s29 = scalar_select %p260_p11, %s1048_s18, 1  ;;  %v332_v27 = vrot.slane %v298_v24, %v331_v23  ;;  %v341_v28 = vrot.slane %v297_v25, %v331_v23  ;;  %v351_v29 = vsub.f32 %v298_v24, %v297_v25  ;;  %v319_v32 = vrot.slane %v297_v25, %v308_v26 }
  0x17   : > { %v309_v33 = vrot.slane %v298_v24, %v308_v26 }
  0x18   : > { %s846_s30 = sshll.u32 %s1150_s29, 3  ;;  %s869_s12 = smul.u32 12, %s1150_s29  ;;  %v352_v36 = vadd.f32 1.0, %v351_v29 }
  0x19   : > { %s263_s7 = scalar_lea.vmem %s1395_s0, %s846_s30  ;;  %s847_s22 = sshll.u32 %s1150_s29, 1 }
  0x1a   : > { %v283_v2 = vld [vmem:[%s263_s7] sm:$0xff]  ;;  %s282_s21 = scalar_lea.vmem %s1398_s3, %s869_s12  ;;  %v354_v40 = vrot.slane %v352_v36, 1  ;;  %s274_s30 = scalar_lea.vmem %s1397_s2, %s847_s22 }
  0x1b   : > { %v299_v3 = vmul.f32 0.5, %v283_v2  ;;  %vm377_vm0 = vcmp.gt.f32.partialorder %v283_v2, 0.5  ;;  %v866_v41 = vld [vmem:[%s282_s21] sm:$0xff]   ;;  %v289_v49 = vld [vmem:[%s282_s21 + $0x8] sm:$0x3]  ;;  %s257_s29 = sand.u32 1, %s1040_s16  }
  0x1c   : > { %v378_v9 = vsel %vm377_vm0, 1, %v1058_v0  ;;  %v356_v44 = vmul.f32 %v354_v40, %v352_v36  ;;  %v1173_v45 = vunpack.c.l.bf16 %v866_v41  ;;  %v1176_v51 = vunpack.c.h.bf16 %v866_v41  ;;  %s845_s5 = sshll.u32 %s257_s29, 3  ;;  %s862_s7 = sshll.u32 %s1048_s18, 7 }
  0x1d   : > { %301 = vrot.lane.b32.xlu0 %v299_v3, %s1060_s8  ;;  %v1178_v54 = vunpack.c.l.bf16 %v289_v49  ;;  %v1204_v40 = vadd.f32 1.0, %v392_v18  ;;  %s1348_s14 = scalar_lea.hbm %s1399_s4, %s862_s7  ;;  %s709_s18 = scalar_lea.sflag [#allocation3], %s257_s29 }
  0x1e   : > { %v367_v48 = vrot.slane %v356_v44, %v308_v26  ;;  %v574_v50 = vand.u32 2147483647, %v1173_v45  ;;  %v575_v58 = vand.u32 2147483647, %v1176_v51  ;;  %vm592_vm3 = vcmp.ge.f32.partialorder %v1173_v45, 0.0  ;;  %s1067_s22 = smov [#allocation2]  }
  0x1f   : > { %v576_v60 = vand.u32 2147483647, %v1178_v54  ;;  %vm593_vm5 = vcmp.ge.f32.partialorder %v1176_v51, 0.0  ;;  %vm594_vm6 = vcmp.ge.f32.partialorder %v1178_v54, 0.0  ;;  %s982_s24 = sshll.u32 %s1067_s22, 4  ;;  %s983_s24 = int_to_ptr.vmem [resolvable:$false] %s982_s24 }
  0x20   : > { %v577_v57 = vsub.f32 0.0, %v574_v50  ;;  %v578_v62 = vsub.f32 0.0, %v575_v58  ;;  %s984_s26 = scalar_lea.vmem %s983_s24, 256 }
  0x21   : > { %v579_v63 = vsub.f32 0.0, %v576_v60 }
  0x22   : > { %v580_v61 = vmul.f32 1.442695, %v577_v57 }
  0x8f   : > { %v302_v4 = vpop.permute.xlu0 %301 }
  0x90   : > { %v304_v5 = vsub.f32 %v283_v2, %v302_v4  ;;  %v305_v6 = vadd.f32 %v302_v4, %v283_v2 }
  0x92   : > { %312 = vperm.xlu1 %940, %v305_v6   ;;  %v357_v7 = vsub.f32 %v305_v6, %v304_v5 }
  0x94   : > { %v358_v8 = vadd.f32 1.0, %v357_v7 }
  0x96   : > { %322 = vperm.xlu1 %940, %v304_v5   ;;  %360 = vrot.lane.b32.xlu0 %v358_v8, %s1061_s9  ;;  %s259_s9 = scalar_lea.vmem [#allocation2], %s845_s5 }
  0x97   : > { %s723_s10 = sshll.u32 %s259_s9, 4  ;;  %s1350_s10 = int_to_ptr.vmem [resolvable:$true] %s723_s10 }
  0x98   : > { %s978_s21 = scalar_lea.vmem %s1350_s10, 128  ;;  %p985_p1 = scmp.lt.s32.totalorder %s1350_s10, %s983_s24 }
  0x99   : > { %p979_p12 = scmp.ne.s32.totalorder %s1350_s10, %s978_s21  ;;  %p986_p2 = scmp.lt.s32.totalorder %s984_s26, %s978_s21 }
  0x9a   : > { %942 = vset.pattern.permute.xlu1 %v1059_v1  ;;  %334 = vperm.xlu0 %941, %v305_v6  }
  0x9b   : > { %343 = vperm.xlu1 %942, %v304_v5   ;;  %p980_p13 = pnand %p979_p12, %p1133_p4  ;;  %p987_p3 = por %p986_p2, %p985_p1 }
  0x9d   : > { %p981_p0 = pneg %p980_p13 }
  0x9e   : > { %944 = vset.pattern.permute.xlu0 %v1062_v10 }
  0x9f   : > { %943 = vset.pattern.permute.xlu1 %v1058_v0  ;;  %380 = vperm.xlu0 %944, %v378_v9   ;;  %p988_p5 = pnand %p987_p3, %p981_p0 }
  0xa3   : > { %947 = vset.pattern.permute.xlu0 %v1063_v11 }
  0xa4   : > { %450 = vperm.xlu0 %947, %v283_v2  }
 0x108   : > { %v361_v12 = vpop.permute.xlu0 %360 }
 0x109   : > { %v363_v13 = vmul.f32 %v361_v12, %v358_v8 }
 0x10b   : > { %370 = vperm.xlu1 %943, %v363_v13  }
 0x10f   : > { %945 = vset.pattern.permute.xlu1 %v1064_v14 }
 0x110   : > { %428 = vperm.xlu1 %945, %v283_v2  }
 0x111   : > { %v313_v17 = vpop.permute.xlu1 %312 }
 0x112   : > { %v315_v38 = vmin.f32 %v309_v33, %v313_v17  ;;  %v462_v33 = vrot.slane %v1159_v16, 2 }
 0x114   : > { %946 = vset.pattern.permute.xlu1 %v1065_v15 }
 0x115   : > { %439 = vperm.xlu1 %946, %v283_v2   ;;  %v323_v22 = vpop.permute.xlu1 %322 }
 0x116   : > { %v325_v37 = vmax.f32 %v319_v32, %v323_v22 }
 0x118   : > { %v326_v42 = vsub.f32 %v315_v38, %v325_v37  ;;  %v285_v38 = vld [vmem:[%s274_s30] sm:$0x3] }
 0x119   : > { %948 = vset.pattern.permute.xlu1 %v1059_v1  ;;  %v335_v30 = vpop.permute.xlu0 %334  ;;  %v1209_v44 = vunpack.c.l.bf16 %v285_v38 }
 0x11a   : > { %417 = vperm.xlu1 %948, %v283_v2   ;;  %v344_v31 = vpop.permute.xlu1 %343  ;;  %v337_v34 = vmin.f32 %v332_v27, %v335_v30  ;;  %v327_v46 = vadd.f32 1.0, %v326_v42  ;;  %v559_v30 = vadd.s32 16, %v1163_v21 }
 0x11b   : > { %v346_v35 = vmax.f32 %v341_v28, %v344_v31  ;;  %v558_v28 = vadd.s32 8, %v1163_v21 }
 0x11c   : > { %v328_v52 = vmax.f32 %v327_v46, 0.0 }
 0x11d   : > { %v347_v39 = vsub.f32 %v337_v34, %v346_v35  ;;  %v560_v35 = vcvt.s32.f32 %v558_v28 }
 0x11e   : > { %949 = vset.pattern.permute.xlu1 %v1058_v0  ;;  %v582_v0 = vmul.f32 1.442695, %v578_v62  ;;  %v381_v1 = vpop.permute.xlu0 %380 }
 0x11f   : > { %406 = vperm.xlu1 %949, %v283_v2   ;;  %v348_v43 = vadd.f32 1.0, %v347_v39  ;;  %v584_v2 = vmul.f32 1.442695, %v579_v63  ;;  %vm382_vm1 = vcmp.eq.s32.totalorder %v381_v1, 1  ;;  %v561_v39 = vcvt.s32.f32 %v559_v30 }
 0x121   : > { %v349_v47 = vmax.f32 %v348_v43, 0.0  ;;  %v1214_v50 = vadd.f32 1.0, %v561_v39 }
 0x123   : > { %v350_v55 = vmul.f32 %v349_v47, %v328_v52  ;;  %v1211_v47 = vadd.f32 1.0, %v560_v35  ;;  %v451_v49 = vpop.permute.xlu0 %450  ;;  %v1066_v52 = vmov 0.0  }
 0x18a   : > { %v371_v53 = vpop.permute.xlu1 %370 }
 0x18b   : > { %v373_v56 = vadd.f32 %v371_v53, %v367_v48 }
 0x18d   : > { %v374_v59 = vsub.f32 %v373_v56, %v350_v55 }
 0x18f   : > { %950 = vrcp.f32 %v374_v59  ;;  %v429_v14 = vpop.permute.xlu1 %428 }
 0x190   : > { %952 = vpow2.f32 %v580_v61 }
 0x191   : > { %954 = vpow2.f32 %v582_v0 }
 0x192   : > { %956 = vpow2.f32 %v584_v2 }
 0x194   : > { %v440_v24 = vpop.permute.xlu1 %439 }
 0x199   : > { %v951_v3 = vpop.eup %950  ;;  %v418_v31 = vpop.permute.xlu1 %417 }
 0x19a   : > { %v376_v4 = vmul.f32 %v951_v3, %v350_v55  ;;  %v1182_v6 = vpop.eup %952 }
 0x19b   : > { %v586_v9 = vadd.f32 1.0, %v1182_v6  ;;  %v1185_v11 = vpop.eup %954  ;;  %v646_v63 = vmul.f32 -0.5, %v1182_v6 }
 0x19c   : > { %v383_v5 = vsel %vm382_vm1, %v376_v4, -1.0  ;;  %v1187_v13 = vpop.eup %956  ;;  %v587_v17 = vadd.f32 1.0, %v1185_v11  ;;  %v655_v0 = vmul.f32 -0.5, %v1185_v11 }
 0x19d   : > { %v384_v7 = vrot.slane %v383_v5, 4  ;;  %958 = vrcp.f32 %v586_v9  ;;  %v588_v22 = vadd.f32 1.0, %v1187_v13 }
 0x19e   : > { %960 = vrcp.f32 %v587_v17  ;;  %v407_v46 = vpop.permute.xlu1 %406 }
 0x19f   : > { %v385_v8 = vmax.f32 %v383_v5, %v384_v7  ;;  %962 = vrcp.f32 %v588_v22 }
 0x1a0   : > { %964 = vlog2.f32 %v586_v9  ;;  %v664_v9 = vmul.f32 -0.5, %v1187_v13 }
 0x1a1   : > { %v386_v10 = vrot.slane %v385_v8, 2  ;;  %966 = vrcp.f32 %v1159_v16 }
 0x1a2   : > { %968 = vrcp.f32 %v462_v33  ;;  %v665_v35 = vadd.f32 1.0, %v664_v9 }
 0x1a3   : > { %v387_v12 = vmax.f32 %v385_v8, %v386_v10  ;;  %970 = vlog2.f32 %v587_v17  ;;  %v634_v8 = vmax.f32 %v1173_v45, 0.0 }
 0x1a4   : > { %972 = vlog2.f32 %v588_v22 }
 0x1a5   : > { %v388_v15 = vrot.slane %v387_v12, 1 }
 0x1a7   : > { %v1191_v20 = vmax.f32 %v387_v12, %v388_v15  ;;  %v959_v27 = vpop.eup %958 }
 0x1a8   : > { %v595_v34 = vmul.f32 %v959_v27, %v1182_v6  ;;  %v961_v36 = vpop.eup %960 }
 0x1a9   : > { %vm393_vm2 = vcmp.ge.f32.partialorder %v383_v5, %v1191_v20  ;;  %v963_v41 = vpop.eup %962  ;;  %v596_v48 = vmul.f32 %v961_v36, %v1185_v11  ;;  %vm476_vm9 = vcmp.lt.f32.partialorder %v1191_v20, 0.5  ;;  %vm478_vm10 = vcmp.gt.f32.partialorder %v1191_v20, 0.4 }
 0x1aa   : > { %v394_v23 = vsel %vm393_vm2, %v392_v18, 8.0  ;;  %v1207_v43 = vsel %vm592_vm3, %v959_v27, %v595_v34  ;;  %v597_v55 = vmul.f32 %v963_v41, %v1187_v13  ;;  %v965_v10 = vpop.eup %964  ;;  %v658_v34 = vand.u32 2147483647, %v1185_v11  ;;  %vm479_vm13 = vmand %vm478_vm10, %vm476_vm9 }
 0x1ab   : > { %v395_v25 = vrot.slane %v394_v23, 4  ;;  %v604_v56 = vsub.f32 1.0, %v1207_v43  ;;  %v1221_v62 = vsel %vm593_vm5, %v961_v36, %v596_v48  ;;  %v1232_v33 = vmul.f32 0.6931472, %v965_v10 }
 0x1ac   : > { %v1227_v7 = vsel %vm594_vm6, %v963_v41, %v597_v55  ;;  %vm1258_vm11 = vcmp.lt.f32.partialorder %v658_v34, 0.0004427343  ;;  %vm682_vm2 = vcmask 1043456  }
 0x1ad   : > { %v396_v26 = vmin.f32 %v394_v23, %v395_v25  ;;  %v647_v23 = vadd.f32 1.0, %v646_v63  ;;  %v656_v25 = vadd.f32 1.0, %v655_v0 }
 0x1af   : > { %v397_v29 = vrot.slane %v396_v26, 2 }
 0x1b1   : > { %v398_v32 = vmin.f32 %v396_v26, %v397_v29 }
 0x1b3   : > { %v399_v37 = vrot.slane %v398_v32, 1 }
 0x1b5   : > { %v400_v42 = vmin.f32 %v398_v32, %v399_v37 }
 0x1b7   : > { %vm401_vm4 = vcmp.eq.f32.partialorder %v392_v18, %v400_v42  ;;  %v967_v18 = vpop.eup %966 }
 0x1b8   : > { %v849_v53 = vsel %vm401_vm4, 1.0, %v1066_v52  ;;  %v969_v26 = vpop.eup %968 }
 0x1b9   : > { %v431_v57 = vmul.f32 %v849_v53, %v429_v14  ;;  %v442_v58 = vmul.f32 %v849_v53, %v440_v24  ;;  %v420_v59 = vmul.f32 %v849_v53, %v418_v31  ;;  %v409_v60 = vmul.f32 %v849_v53, %v407_v46  ;;  %v971_v31 = vpop.eup %970 }
 0x1ba   : > { %v453_v61 = vmul.f32 %v849_v53, %v451_v49  ;;  %v649_v24 = vand.u32 2147483647, %v1182_v6  ;;  %v973_v36 = vpop.eup %972  ;;  %v1236_v46 = vmul.f32 %v1182_v6, %v647_v23  ;;  %v667_v49 = vand.u32 2147483647, %v1187_v13 }
 0x1bb   : > { %v432_v1 = vrot.slane %v431_v57, 4  ;;  %v443_v2 = vrot.slane %v442_v58, 4  ;;  %v421_v3 = vrot.slane %v420_v59, 4  ;;  %v410_v4 = vrot.slane %v409_v60, 4 }
 0x1bc   : > { %v454_v5 = vrot.slane %v453_v61, 4  ;;  %vm1238_vm7 = vcmp.lt.f32.partialorder %v649_v24, 0.0004427343  ;;  %v1248_v63 = vmul.f32 0.6931472, %v973_v36  ;;  %v636_v24 = vmax.f32 %v1178_v54, 0.0 }
 0x1bd   : > { %v433_v12 = vadd.f32 %v432_v1, %v431_v57  ;;  %v444_v14 = vadd.f32 %v443_v2, %v442_v58  ;;  %v422_v15 = vadd.f32 %v421_v3, %v420_v59  ;;  %v411_v17 = vadd.f32 %v410_v4, %v409_v60 }
 0x1be   : > { %v455_v22 = vadd.f32 %v454_v5, %v453_v61  ;;  %v1243_v60 = vmul.f32 0.6931472, %v971_v31  ;;  %v1246_v61 = vmul.f32 %v1185_v11, %v656_v25  ;;  %v1253_v4 = vmul.f32 %v1187_v13, %v665_v35 }
 0x1bf   : > { %v434_v27 = vrot.slane %v433_v12, 2  ;;  %v445_v28 = vrot.slane %v444_v14, 2  ;;  %v423_v29 = vrot.slane %v422_v15, 2  ;;  %v412_v30 = vrot.slane %v411_v17, 2 }
 0x1c0   : > { %v456_v32 = vrot.slane %v455_v22, 2  ;;  %vm1262_vm12 = vcmp.lt.f32.partialorder %v667_v49, 0.0004427343 }
 0x1c1   : > { %v435_v37 = vadd.f32 %v434_v27, %v433_v12  ;;  %v446_v38 = vadd.f32 %v445_v28, %v444_v14  ;;  %v424_v39 = vadd.f32 %v423_v29, %v422_v15  ;;  %v413_v41 = vadd.f32 %v412_v30, %v411_v17 }
 0x1c2   : > { %v457_v42 = vadd.f32 %v456_v32, %v455_v22  ;;  %v635_v14 = vmax.f32 %v1176_v51, 0.0  ;;  %v605_v22 = vsub.f32 1.0, %v1221_v62  ;;  %v651_v27 = vsel %vm1238_vm7, %v1236_v46, %v1232_v33 }
 0x1c3   : > { %v436_v53 = vrot.slane %v435_v37, 1  ;;  %v447_v55 = vrot.slane %v446_v38, 1  ;;  %v425_v57 = vrot.slane %v424_v39, 1  ;;  %v414_v58 = vrot.slane %v413_v41, 1 }
 0x1c4   : > { %v458_v59 = vrot.slane %v457_v42, 1  ;;  %v669_v20 = vsel %vm1262_vm12, %v1253_v4, %v1248_v63 }
 0x1c5   : > { %v437_v6 = vadd.f32 %v436_v53, %v435_v37  ;;  %v448_v0 = vadd.f32 %v447_v55, %v446_v38  ;;  %v426_v1 = vadd.f32 %v425_v57, %v424_v39  ;;  %v415_v2 = vadd.f32 %v414_v58, %v413_v41 }
 0x1c6   : > { %v459_v3 = vadd.f32 %v458_v59, %v457_v42 }
 0x1c7   : > { %v469_v5 = vmul.f32 %v967_v18, %v437_v6  ;;  %v472_v9 = vmul.f32 %v967_v18, %v448_v0  ;;  %v466_v10 = vsub.f32 %v426_v1, %v1159_v16  ;;  %v460_v11 = vsub.f32 %v415_v2, %v1159_v16 }
 0x1c8   : > { %v475_v12 = vadd.f32 1.0, %v459_v3  ;;  %v606_v18 = vsub.f32 1.0, %v1227_v7 }
 0x1c9   : > { %974 = vlog2.f32 %v469_v5  ;;  %v467_v13 = vmul.f32 %v969_v26, %v466_v10  ;;  %v465_v23 = vmul.f32 %v969_v26, %v460_v11  ;;  %v660_v26 = vsel %vm1258_vm11, %v1246_v61, %v1243_v60 }
 0x1ca   : > { %976 = vlog2.f32 %v472_v9  ;;  %v477_v16 = vsel %vm476_vm9, 0.0, %v475_v12 }
 0x1cb   : > { %v1275_v25 = vsel %vm479_vm13, -1.0, %v477_v16  ;;  %v1297_v28 = vsub.f32 %v1209_v44, %v467_v13  ;;  %v504_v32 = vsub.f32 %v1209_v44, %v465_v23 }
 0x1cc   : > { %vm487_vm14 = vcmp.gt.f32.partialorder %v1275_v25, 0.0  ;;  %vm565_vm15 = vcmp.eq.f32.partialorder %v1275_v25, %v1204_v40  ;;  %vm566_vm0 = vcmp.eq.f32.partialorder %v1275_v25, %v1211_v47  ;;  %vm567_vm1 = vcmp.eq.f32.partialorder %v1275_v25, %v1214_v50 }
 0x1cd   : > { %v850_v29 = vsel %vm487_vm14, 1.0, %v1066_v52  ;;  %v858_v30 = vsel %vm565_vm15, 1.0, %v1066_v52  ;;  %v859_v31 = vsel %vm566_vm0, 1.0, %v1066_v52  ;;  %v860_v47 = vsel %vm567_vm1, 1.0, %v1066_v52 }
 0x1ce   : > { %v494_v40 = vsel %vm493_vm8, %v850_v29, 0.0  ;;  %v601_v33 = vmul.f32 %v858_v30, %v1207_v43  ;;  %v602_v50 = vmul.f32 %v859_v31, %v1221_v62  ;;  %v607_v34 = vsub.f32 1.0, %v858_v30 }
 0x1cf   : > { %495 = vadd.xlane.f32.xlu0 %v494_v40  ;;  %v608_v35 = vsub.f32 1.0, %v859_v31  ;;  %v609_v36 = vsub.f32 1.0, %v860_v47  ;;  %v603_v37 = vmul.f32 %v860_v47, %v1227_v7  ;;  %v619_v38 = vmul.f32 0.25, %v858_v30 }
 0x1d0   : > { %v620_v39 = vmul.f32 0.25, %v859_v31  ;;  %v637_v41 = vmul.f32 %v1173_v45, %v858_v30  ;;  %v610_v42 = vmul.f32 %v607_v34, %v604_v56  ;;  %v622_v52 = vmul.f32 0.75, %v607_v34 }
 0x1d1   : > { %v611_v46 = vmul.f32 %v608_v35, %v605_v22  ;;  %v612_v48 = vmul.f32 %v609_v36, %v606_v18  ;;  %v623_v49 = vmul.f32 0.75, %v608_v35  ;;  %v624_v53 = vmul.f32 0.75, %v609_v36 }
 0x1d2   : > { %v638_v55 = vmul.f32 %v1176_v51, %v859_v31  ;;  %v639_v62 = vmul.f32 %v860_v47, %v1178_v54  ;;  %v613_v58 = vadd.f32 %v610_v42, %v601_v33  ;;  %v621_v60 = vmul.f32 0.25, %v860_v47 }
 0x1d3   : > { %v975_v57 = vpop.eup %974  ;;  %v614_v59 = vadd.f32 %v611_v46, %v602_v50  ;;  %v615_v7 = vadd.f32 %v612_v48, %v603_v37  ;;  %vm489_vm3 = vcmp.gt.f32.partialorder %v1275_v25, -1.0  ;;  %v625_v43 = vadd.f32 %v622_v52, %v619_v38 }
 0x1d4   : > { %v977_v61 = vpop.eup %976  ;;  %v471_v63 = vmul.f32 0.6931472, %v975_v57  ;;  %v626_v56 = vadd.f32 %v623_v49, %v620_v39  ;;  %v640_v6 = vsub.f32 %v634_v8, %v637_v41  ;;  %v616_v0 = vsub.f32 1.0, %v613_v58 }
 0x1d5   : > { %v617_v1 = vsub.f32 1.0, %v614_v59  ;;  %v618_v2 = vsub.f32 1.0, %v615_v7  ;;  %v627_v3 = vadd.f32 %v624_v53, %v621_v60  ;;  %v474_v4 = vmul.f32 0.6931472, %v977_v61 }
 0x1d6   : > { %v523_v54 = vsub.f32 %v1209_v44, %v471_v63  ;;  %v641_v5 = vsub.f32 %v635_v14, %v638_v55  ;;  %v642_v9 = vsub.f32 %v636_v24, %v639_v62  ;;  %v628_v10 = vmul.f32 %v625_v43, %v616_v0 }
 0x1d7   : > { %v629_v11 = vmul.f32 %v626_v56, %v617_v1  ;;  %v630_v12 = vmul.f32 %v627_v3, %v618_v2  ;;  %v670_v15 = vadd.f32 %v651_v27, %v640_v6  ;;  %v505_v22 = vand.u32 2147483647, %v504_v32 }
 0x1d8   : > { %v671_v17 = vadd.f32 %v660_v26, %v641_v5  ;;  %v672_v13 = vadd.f32 %v669_v20, %v642_v9  ;;  %v507_v45 = vmul.f32 0.5, %v504_v32  ;;  %v631_v8 = vmul.f32 %v628_v10, %v616_v0 }
 0x1d9   : > { %v632_v18 = vmul.f32 %v629_v11, %v617_v1  ;;  %v633_v23 = vmul.f32 %v630_v12, %v618_v2  ;;  %v512_v16 = vand.u32 2147483647, %v1297_v28  ;;  %v535_v29 = vsub.f32 %v1209_v44, %v474_v4 }
 0x1da   : > { %vm1323_vm4 = vcmp.lt.f32.partialorder %v505_v22, 1.0  ;;  %v508_v51 = vmul.f32 %v507_v45, %v504_v32  ;;  %v514_v14 = vmul.f32 0.5, %v1297_v28  ;;  %v673_v24 = vmul.f32 %v670_v15, %v631_v8 }
 0x1db   : > { %v674_v27 = vmul.f32 %v671_v17, %v632_v18  ;;  %v675_v26 = vmul.f32 %v672_v13, %v633_v23  ;;  %vm513_vm5 = vcmp.lt.f32.partialorder %v512_v16, 1.0  ;;  %v851_v20 = vadd.f32 -0.5, %v505_v22 }
 0x1dc   : > { %v515_v31 = vmul.f32 %v514_v14, %v1297_v28  ;;  %v852_v40 = vadd.f32 -0.5, %v512_v16  ;;  %v524_v47 = vand.u32 2147483647, %v523_v54  ;;  %v678_v33 = vsel %vm489_vm3, %v673_v24, 0.0 }
 0x1dd   : > { %v679_v44 = vsel %vm489_vm3, %v674_v27, 0.0  ;;  %v680_v32 = vsel %vm489_vm3, %v675_v26, 0.0  ;;  %v526_v50 = vmul.f32 0.5, %v523_v54  ;;  %v536_v39 = vand.u32 2147483647, %v535_v29 }
 0x1de   : > { %v681_v34 = vadd.f32 %v679_v44, %v678_v33  ;;  %v683_v35 = vsel %vm682_vm2, %v680_v32, 0.0  ;;  %v517_v36 = vsel %vm513_vm5, %v515_v31, %v852_v40  ;;  %vm525_vm6 = vcmp.lt.f32.partialorder %v524_v47, 1.0 }
 0x1df   : > { %v853_v37 = vrot.slane %v517_v36, 9  ;;  %v527_v38 = vmul.f32 %v526_v50, %v523_v54  ;;  %v854_v28 = vadd.f32 -0.5, %v524_v47  ;;  %v538_v42 = vmul.f32 0.5, %v535_v29 }
 0x1e0   : > { %v684_v41 = vadd.f32 %v683_v35, %v681_v34  ;;  %v510_v46 = vsel %vm1323_vm4, %v508_v51, %v851_v20  ;;  %vm537_vm7 = vcmp.lt.f32.partialorder %v536_v39, 1.0  ;;  %v856_v52 = vadd.f32 -0.5, %v536_v39 }
 0x1e1   : > { %v529_v48 = vsel %vm525_vm6, %v527_v38, %v854_v28  ;;  %v522_v49 = vadd.f32 %v853_v37, %v510_v46  ;;  %v539_v55 = vmul.f32 %v538_v42, %v535_v29  ;;  %v482_v45 = vand.u32 127, %v306_v19 }
 0x1e2   : > { %685 = vadd.xlane.f32.xlu0 %v684_v41  ;;  %v855_v53 = vrot.slane %v529_v48, 10 }
 0x1e3   : > { %v541_v57 = vsel %vm537_vm7, %v539_v55, %v856_v52  ;;  %vm699_vm9 = vcmp.eq.s32.totalorder %v482_v45, 2  ;;  %vm697_vm10 = vcmp.eq.s32.totalorder %v482_v45, 1  ;;  %vm695_vm11 = vcmp.eq.s32.totalorder %v482_v45, 0 }
 0x1e4   : > { %v534_v62 = vadd.f32 %v855_v53, %v522_v49  ;;  %v857_v58 = vrot.slane %v541_v57, 11 }
 0x1e6   : > { %v546_v59 = vadd.f32 %v857_v58, %v534_v62 }
 0x1e8   : > { %v547_v7 = vsel %vm487_vm14, %v546_v59, 0.0 }
 0x1e9   : > { %v548_v60 = vsel %vm493_vm8, %v547_v7, 0.0  ;;  %vm694_vm8 = vcmp.eq.s32.totalorder %v1163_v21, 0 }
 0x1ea   : > { %549 = vadd.xlane.f32.xlu1 %v548_v60  ;;  %vm700_vm12 = vmand %vm694_vm8, %vm699_vm9 }
 0x1eb   : > { %vm698_vm13 = vmand %vm694_vm8, %vm697_vm10 }
 0x1ec   : > { %vm696_vm14 = vmand %vm694_vm8, %vm695_vm11 }
 0x25c   : > { %v496_v61 = vpop.xlane.xlu0 %495 }
 0x25d   : > { %v497_v63 = vrot.slane %v496_v61, 4 }
 0x25f   : > { %v498_v43 = vadd.f32 %v497_v63, %v496_v61 }
 0x261   : > { %v499_v56 = vrot.slane %v498_v43, 2 }
 0x263   : > { %v500_v6 = vadd.f32 %v499_v56, %v498_v43 }
 0x265   : > { %v501_v0 = vrot.slane %v500_v6, 1 }
 0x267   : > { %v502_v1 = vadd.f32 %v501_v0, %v500_v6 }
 0x269   : > { %870 = vpush %v502_v1 }
 0x26f   : > { %v686_v2 = vpop.xlane.xlu0 %685 }
 0x270   : > { %v687_v3 = vrot.slane %v686_v2, 4 }
 0x272   : > { %v688_v54 = vadd.f32 %v687_v3, %v686_v2 }
 0x274   : > { %v689_v4 = vrot.slane %v688_v54, 2 }
 0x276   : > { %v690_v10 = vadd.f32 %v689_v4, %v688_v54 }
 0x277   : > { %v550_v5 = vpop.xlane.xlu1 %549 }
 0x278   : > { %v551_v9 = vrot.slane %v550_v5, 4  ;;  %v691_v15 = vrot.slane %v690_v10, 1 }
 0x27a   : > { %v552_v25 = vadd.f32 %v551_v9, %v550_v5  ;;  %v692_v22 = vadd.f32 %v691_v15, %v690_v10 }
 0x27c   : > { %v553_v11 = vrot.slane %v552_v25, 2 }
 0x27e   : > { %v554_v12 = vadd.f32 %v553_v11, %v552_v25 }
 0x280   : > { %v555_v17 = vrot.slane %v554_v12, 1 }
 0x282   : > { %v556_v13 = vadd.f32 %v555_v17, %v554_v12 }
 0x284   : > { %872 = vpush %v556_v13 }
 0x285   : > { %874 = vpush %v692_v22 }
 0x29a   : > { %s871_s6 = spop %870 }
 0x29b   : > { %v701_v8 = vstv %s871_s6 }
 0x29c   : > { %v702_v23 = vsel %vm700_vm12, %v701_v8, 0.0 }
 0x2b5   : > { %s873_s8 = spop %872 }
 0x2b6   : > { %v705_v18 = vstv %s873_s8  ;;  %s875_s11 = spop %874 }
 0x2b7   : > { %v703_v19 = vstv %s875_s11 }
 0x2b8   : > { %v704_v16 = vsel %vm698_vm13, %v703_v19, %v702_v23 }
 0x2b9   : > { %v706_v21 = vsel %vm696_vm14, %v705_v18, %v704_v16 }
 0x2ba   : > { %707 = vst [vmem:[%s259_s9] sm:$0xff] %v706_v21 }
 0x2bb   : > { %991 = shalt.err (!%p988_p5)
}
 0x2bc   : > { %s992_s30 = scalar_lea.hbm %s1348_s14, 128  ;;  %s996_s6 = scalar_lea.hbm %s1399_s4, 256 }
 0x2bd   : > { %p993_p6 = scmp.ne.s32.totalorder %s1348_s14, %s992_s30  ;;  %p997_p10 = scmp.lt.u32.totalorder %s1348_s14, %s1399_s4 }
 0x2be   : > { %p998_p11 = scmp.lt.u32.totalorder %s996_s6, %s992_s30  ;;  %p1000_p13 = scmp.lt.u32.totalorder %s992_s30, %s1348_s14 }
 0x2bf   : > { %p994_p7 = pnand %p993_p6, %p1133_p4 }
 0x2c0   : > { %p999_p12 = por %p998_p11, %p997_p10 }
 0x2c1   : > { %p995_p9 = pneg %p994_p7 }
 0x2c2   : > { %p1001_p0 = por %p1000_p13, %p999_p12 }
 0x2c4   : > { %p1002_p1 = pnand %p1001_p0, %p995_p9 }
 0x2c6   : > { %1005 = shalt.err (!%p1002_p1)
}
 0x2c7   : > { %876 = dma.vmem_to_hbm [thread:$0]  (%p1133_p4), %s1350_s10, 128, %s1348_s14, %s709_s18  }
 0x2c8 PF: > { %p882_p2 = scmp.ge.s32.totalorder %s1056_s20, 2  ;;  %s735_s9 = sand.u32 1, %s1036_s15  }
 0x2c9   : > { %s736_s11 = scalar_lea.sflag [#allocation3], %s735_s9 }
 0x2ca   : > { %p879_p3 = pnand %p882_p2, %p1140_p8 }
 0x2cc   : > { %1031 = dma.done.wait (!%p879_p3), %s736_s11, 128  }
 0x2cd   : > { %1033 = vsyncadd (!%p879_p3), %s736_s11, 4294967168  ;;  %s17_s20 = sadd.s32 1, %s1056_s20   ;;  %s1410_s15 = smov %s1040_s16 }
 0x2ce   : > { %p14_p5 = scmp.ge.s32.totalorder %s17_s20, 4   ;;  %s1411_s16 = smov %s1044_s17 }
 0x2cf   : > { %s1412_s17 = smov %s1146_s28  ;;  %s1413_s18 = smov %s1052_s19 }
 0x2d0   : > { %s1414_s19 = smov %s1416_s23  ;;  %16 = sbr.rel (!%p14_p5) target bundleno = 4 (0x4), region = 80 }
 0x2d7   :  { %741 = vsyncpa [#allocation3], 1 }
 0x2d8   :  { %743 = vsyncpa [#allocation3 + $0x1], 1 }

</bundles_post_ra>
